<compile_context>
chip_gen: v7x
topology: tpu7x:2x2x1
jax: 0.10.0
libtpu: 0.0.40
codegen_flags: <defaults>
</compile_context>

<pallas_src>
import jax
import jax.numpy as jnp
from jax.experimental import pallas as pl
from jax.experimental.pallas import tpu as pltpu


def _ensemble_kernel(w_ref, x_ref, o_ref):
    # w_ref: (M, 1)  softmax'd ensemble weights (f32), replicated across tiles
    # x_ref: (M, TB) per-model outputs for this batch tile (B on the lane axis)
    # o_ref: (1, TB) lane-dense weighted-sum logits for this tile
    x = x_ref[...].astype(jnp.float32)
    o_ref[...] = jnp.sum(w_ref[...] * x, axis=0, keepdims=True).astype(o_ref.dtype)


def _round_up(x, m):
    return ((x + m - 1) // m) * m


def trainable_ensemble_forward(raw_weights, model_outputs, *, tb=128 * 1024):
    """raw_weights: (M,), model_outputs: (B, M) -> logits (B,) f32."""
    B, M = model_outputs.shape

    # Hoisted parameter transform: softmax over the tiny model axis is computed
    # once here instead of being recomputed every grid step inside the kernel.
    weights = jax.nn.softmax(raw_weights.astype(jnp.float32)).reshape(M, 1)

    # Lane-dense layout: put B on the last (lane) axis. Callers that can store
    # model outputs as (M, B) natively should do so and skip this transpose.
    x_t = jnp.transpose(model_outputs)  # (M, B), native dtype (no upcast)

    # Tile size: multiple of 128 lanes; don't over-pad tiny batches.
    tb = max(128, min(tb, _round_up(B, 128)))
    b_pad = _round_up(B, tb)
    if b_pad != B:
        x_t = jnp.pad(x_t, ((0, 0), (0, b_pad - B)))
    grid = (b_pad // tb,)

    out = pl.pallas_call(
        _ensemble_kernel,
        out_shape=jax.ShapeDtypeStruct((1, b_pad), jnp.float32),
        grid=grid,
        in_specs=[
            pl.BlockSpec((M, 1), lambda i: (0, 0)),   # weights, same block every tile
            pl.BlockSpec((M, tb), lambda i: (0, i)),  # batch tile of model outputs
        ],
        out_specs=pl.BlockSpec((1, tb), lambda i: (0, i)),
        compiler_params=pltpu.CompilerParams(
            dimension_semantics=("parallel",),        # shard B tiles across TCs (v7x)
            vmem_limit_bytes=32 * 1024 * 1024,
        ),
    )(weights, x_t)
    return out[0, :B]


if __name__ == "__main__":
    key = jax.random.PRNGKey(0)
    num_models = 4
    batch = 8

    # Deterministic parameter init: torch.ones(num_models) as in __init__.
    raw_weights = jnp.ones((num_models,), dtype=jnp.float32)

    # Synthetic per-model outputs.
    model_outputs = jax.random.normal(key, (batch, num_models), dtype=jnp.float32)

    logits = trainable_ensemble_forward(raw_weights, model_outputs)
    jax.block_until_ready(logits)

    # Cross-check against plain-JAX reference of the torch forward.
    ref_w = jax.nn.softmax(raw_weights)
    ref = jnp.sum(ref_w * model_outputs, axis=1)
    assert logits.shape == (batch,)
    assert jnp.allclose(logits, ref, atol=1e-5, rtol=1e-5), (logits, ref)

    print("KERNEL_OK")
</pallas_src>

<mosaic_0001>
module attributes {stable_mosaic.version = 11 : i64} {
  func.func @_ensemble_kernel(%arg0: i32, %arg1: memref<4x1xf32, #tpu.memory_space<vmem>>, %arg2: memref<4x128xf32, #tpu.memory_space<vmem>>, %arg3: memref<1x128xf32, #tpu.memory_space<vmem>>) attributes {dimension_semantics = [#tpu.dimension_semantics<parallel>], iteration_bounds = array<i64: 1>, scalar_prefetch = 0 : i64, scratch_operands = 0 : i64, tpu.core_type = #tpu.core_type<tc>, window_params = [{pipeline_mode = #tpu.pipeline_mode<synchronous>, transform_indices = @transform_0, window_bounds = array<i64: 4, 1>}, {transform_indices = @transform_1, window_bounds = array<i64: 4, 128>}, {transform_indices = @transform_2, window_bounds = array<i64: 1, 128>}]} {
    %c0 = arith.constant 0 : index
    %c0_0 = arith.constant 0 : index
    %0 = vector.load %arg2[%c0, %c0_0] : memref<4x128xf32, #tpu.memory_space<vmem>>, vector<4x128xf32>
    %c0_1 = arith.constant 0 : index
    %c0_2 = arith.constant 0 : index
    %1 = vector.load %arg1[%c0_1, %c0_2] : memref<4x1xf32, #tpu.memory_space<vmem>>, vector<4x1xf32>
    %2 = vector.broadcast %1 : vector<4x1xf32> to vector<4x128xf32>
    %3 = arith.mulf %2, %0 : vector<4x128xf32>
    %cst = arith.constant dense<0.000000e+00> : vector<128xf32>
    %4 = vector.multi_reduction <add>, %3, %cst [0] : vector<4x128xf32> to vector<128xf32>
    %5 = vector.shape_cast %4 : vector<128xf32> to vector<1x128xf32>
    %c0_3 = arith.constant 0 : index
    %c0_4 = arith.constant 0 : index
    %6 = vector.load %arg3[%c0_3, %c0_4] : memref<1x128xf32, #tpu.memory_space<vmem>>, vector<1x128xf32>
    tpu.vector_store %arg3[%c0_3, %c0_4], %5 {strides = array<i32>} : memref<1x128xf32, #tpu.memory_space<vmem>>, vector<1x128xf32>,
    return
  }
  func.func @transform_0(%arg0: i32) -> (i32, i32) {
    %c0_i32 = arith.constant 0 : i32
    %c0_i32_0 = arith.constant 0 : i32
    %c0_i32_1 = arith.constant 0 : i32
    return %c0_i32, %c0_i32_0 : i32, i32
  }
  func.func @transform_1(%arg0: i32) -> (i32, i32) {
    %c0_i32 = arith.constant 0 : i32
    %c0_i32_0 = arith.constant 0 : i32
    return %c0_i32, %arg0 : i32, i32
  }
  func.func @transform_2(%arg0: i32) -> (i32, i32) {
    %c0_i32 = arith.constant 0 : i32
    %c0_i32_0 = arith.constant 0 : i32
    return %c0_i32, %arg0 : i32, i32
  }
}

</mosaic_0001>

<bundles_post_ra>
// kernel: tpu_custom_call.1
= control target key start
LH: loop header
LB: loop body
LE: loop exit
PB: predicated region body
PF: predicated region fallthrough
CT: control target
= control target key end

     0   :  { %s105_s0 = inlined_call_operand.vmem [shape: f32[4,1], index: 0, kind: input, shape index: {}]   ;;  %s106_s1 = inlined_call_operand.vmem [shape: f32[4,128], index: 1, kind: input, shape index: {}]   ;;  %s107_s2 = inlined_call_operand.hbm [shape: f32[1,128], index: 2, kind: output, shape index: {}]  }
   0x1   :  { %v13_v0 = vld [vmem:[%s105_s0] sm:$0xf] }
   0x2   :  { %7 = vsyncpa [#allocation3], 0  ;;  %v70_v1 = vmov 0   ;;  %v12_v2 = vld [vmem:[%s106_s1] sm:$0xf]  ;;  %vm20_vm0 = vcmask 1043456  }
   0x3   :  { %45 = vset.pattern.permute.xlu0 %v70_v1  ;;  %s71_s13 = smov [#allocation2]  }
   0x4   :  { %16 = vperm.xlu0 %45, %v13_v0   ;;  %s35_s14 = sshll.u32 %s71_s13, 4  ;;  %s36_s14 = int_to_ptr.vmem [resolvable:$true] %s35_s14 }
   0x5   :  { %s46_s0 = scalar_lea.vmem %s36_s14, 16  ;;  %s50_s15 = scalar_lea.vmem %s36_s14, 32 }
   0x6   :  { %p47_p0 = scmp.ne.s32.totalorder %s36_s14, %s46_s0  ;;  %p51_p1 = scmp.lt.s32.totalorder %s36_s14, %s36_s14 }
   0x7   :  { %p52_p2 = scmp.lt.s32.totalorder %s50_s15, %s46_s0 }
   0x9   :  { %p53_p3 = por %p52_p2, %p51_p1 }
   0xb   :  { %p54_p4 = pnand %p53_p3, %p47_p0 }
  0x83   :  { %v17_v3 = vpop.permute.xlu0 %16 }
  0x84   :  { %v19_v4 = vmul.f32 %v17_v3, %v12_v2 }
  0x86   :  { %v21_v5 = vsel %vm20_vm0, %v19_v4, 0.0 }
  0x87   :  { %v22_v6 = vrot.slane %v21_v5, 4 }
  0x89   :  { %v23_v7 = vadd.f32 %v22_v6, %v21_v5 }
  0x8b   :  { %v24_v8 = vrot.slane %v23_v7, 2 }
  0x8d   :  { %v25_v9 = vadd.f32 %v24_v8, %v23_v7 }
  0x8f   :  { %v26_v10 = vrot.slane %v25_v9, 1 }
  0x91   :  { %v27_v11 = vadd.f32 %v26_v10, %v25_v9 }
  0x93   :  { %28 = vst [vmem:[#allocation2] sm:$0x1] %v27_v11 }
  0x94   :  { %57 = shalt.err (!%p54_p4)
}
  0x95   :  { %s58_s17 = scalar_lea.hbm %s107_s2, 16 }
  0x96   :  { %p59_p5 = scmp.ne.s32.totalorder %s107_s2, %s58_s17  ;;  %p62_p6 = scmp.lt.u32.totalorder %s58_s17, %s107_s2 }
  0x98   :  { %p64_p7 = pnand %p62_p6, %p59_p5 }
  0x9a   :  { %67 = shalt.err (!%p64_p7)
}
  0x9b   :  { %38 = dma.vmem_to_hbm [thread:$0]  %s36_s14, 16, %s107_s2, [#allocation3]  }
  0x9c   :  { %68 = dma.done.wait [#allocation3], 16  }
  0x9d   :  { %69 = vsyncadd [#allocation3], 4294967280 }
  0x9e   :  { %42 = vsyncpa [#allocation3], 1 }

</bundles_post_ra>
